<compile_context>
chip_gen: v6e
topology: v6e:2x2x1
jax: 0.10.0
libtpu: 0.0.40
codegen_flags: <defaults>
</compile_context>

<pallas_src>
import numpy as np
import jax
import jax.numpy as jnp
from jax.experimental import pallas as pl
from jax.experimental.pallas import tpu as pltpu

D = 768  # feature dim implied by nn.Linear(768 * 2, 2)


# ----------------------------------------------------------------------------
# helpers
# ----------------------------------------------------------------------------
def _round_up(x: int, m: int) -> int:
    return ((x + m - 1) // m) * m


def _default_tm_target() -> int:
    """Projection row-tile target per TPU generation.

    v5-class (16 MiB default scoped VMEM): 1024 f32 rows (~12.6 MiB double-buffered).
    v6e / v7x: 2048 rows (~25 MiB) to amortize the ~0.35 us/grid-step overhead
    against their higher HBM bandwidth; the explicit vmem_limit_bytes below keeps
    this within budget (<< 64 MiB v7x physical VMEM per TC).
    """
    try:
        kind = jax.devices()[0].device_kind.lower()
    except Exception:
        return 1024
    if ("v2" in kind) or ("v3" in kind) or ("v4" in kind) or ("v5" in kind):
        return 1024
    return 2048


def _pick_tm(n: int, target: int) -> int:
    """Row tile for the projection kernel.

    * multiple of 8 (f32 sublane pack) unless it equals the full row count,
    * capped at `target`,
    * capped at ~n/2 so the parallel grid has >= 2 steps (v7x megacore sharding).
    No input padding: the last block may be ragged (handled/masked by Pallas).
    """
    if n <= 8:
        return n                      # single full-extent block (always legal)
    half = _round_up((n + 1) // 2, 8)
    return max(8, min(_round_up(target, 8), half))


def _pick_tn(n_all: int, cap: int = 65536) -> int:
    """Lane tile for the score/loss kernel: one full-width step when it fits."""
    if n_all <= cap:
        return n_all                  # single lane-dense step, full-extent block
    return cap                        # multiple of 128; ragged tail masked in-kernel


# ----------------------------------------------------------------------------
# Kernel 1: heavy projection (cF @ Wc, z @ Wz), row-tiled, f32 streamed from HBM
# ----------------------------------------------------------------------------
def _proj_kernel(c_ref, z_ref, wc_ref, wz_ref, cp_ref, zp_ref):
    # f32 row tiles streamed from HBM (mem-bound; MXU has huge slack), f32 accum.
    cp_ref[...] = jnp.dot(c_ref[...], wc_ref[...], preferred_element_type=jnp.float32)
    zp_ref[...] = jnp.dot(z_ref[...], wz_ref[...], preferred_element_type=jnp.float32)


def project(cf, z, wc, wz, *, tm_target=None):
    n, d = cf.shape
    assert d == D, f"expected feature dim {D}, got {d}"
    if tm_target is None:
        tm_target = _default_tm_target()
    tm = _pick_tm(n, tm_target)
    grid = (pl.cdiv(n, tm),)

    # Explicit scoped-VMEM budget: 2 f32 input tiles + 2 tiny output tiles
    # (double-buffered) + resident [768, 2] weights, plus generous margin.
    tile_bytes = 2 * (2 * tm * d * 4) + 2 * (2 * tm * 2 * 4) + 2 * (d * 2 * 4)
    vmem_limit = int(min(56 * 1024 * 1024, tile_bytes + 8 * 1024 * 1024))

    cp, zp = pl.pallas_call(
        _proj_kernel,
        out_shape=(
            jax.ShapeDtypeStruct((n, 2), jnp.float32),
            jax.ShapeDtypeStruct((n, 2), jnp.float32),
        ),
        grid=grid,
        in_specs=[
            pl.BlockSpec((tm, d), lambda i: (i, 0)),   # cFeatures row tile
            pl.BlockSpec((tm, d), lambda i: (i, 0)),   # z row tile
            pl.BlockSpec((d, 2), lambda i: (0, 0)),    # W[:768]  (resident)
            pl.BlockSpec((d, 2), lambda i: (0, 0)),    # W[768:]  (resident)
        ],
        out_specs=(
            pl.BlockSpec((tm, 2), lambda i: (i, 0)),
            pl.BlockSpec((tm, 2), lambda i: (i, 0)),
        ),
        compiler_params=pltpu.CompilerParams(
            dimension_semantics=("parallel",),
            vmem_limit_bytes=vmem_limit,
        ),
    )(cf, z, wc, wz)
    return cp, zp


# ----------------------------------------------------------------------------
# Kernel 2: lane-dense fused score assembly + weighted 2-class cross entropy
#   inputs  : a [2, N], b [2, N], bias [2, 1]   (row index -> lanes)
#   outputs : logits [2, N], loss [1, 1] (scalar, accumulated in-kernel)
# ----------------------------------------------------------------------------
def _make_score_ce_kernel(n_pos: int, n_neg: int, n_all: int, tn: int):
    inv_pos = 1.0 / float(n_pos)
    inv_neg = 1.0 / float(n_neg)

    def kernel(a_ref, b_ref, bias_ref, score_ref, loss_ref):
        i = pl.program_id(0)

        @pl.when(i == 0)
        def _init():
            loss_ref[...] = jnp.zeros_like(loss_ref)

        s = a_ref[...] + b_ref[...] + bias_ref[...]            # [2, tn] f32
        score_ref[...] = s
        s0 = s[0:1, :]
        s1 = s[1:2, :]
        # closed-form 2-class logsumexp (no wide reductions)
        mx = jnp.maximum(s0, s1)
        lse = mx + jnp.log(1.0 + jnp.exp(-jnp.abs(s0 - s1)))
        # columns [0, n_pos) are positives (label 0, weight 1/n_pos);
        # columns [n_pos, n_all) are negatives (label 1, weight 1/n_neg)
        col = i * tn + jax.lax.broadcasted_iota(jnp.int32, (1, tn), 1)
        is_pos = col < n_pos
        valid = col < n_all                                    # ragged-tail mask
        picked = jnp.where(is_pos, s0, s1)
        weight = jnp.where(is_pos, inv_pos, inv_neg)
        per = jnp.where(valid, (lse - picked) * weight, 0.0)
        loss_ref[...] += jnp.sum(per, keepdims=True)           # (1,1) scalar accum

    return kernel


def scores_and_loss(a_t, b_t, bias_col, *, n_pos: int, n_neg: int):
    n_all = a_t.shape[1]
    tn = _pick_tn(n_all)
    kernel = _make_score_ce_kernel(n_pos, n_neg, n_all, tn)
    scores_t, loss = pl.pallas_call(
        kernel,
        out_shape=(
            jax.ShapeDtypeStruct((2, n_all), jnp.float32),     # lane-dense logits
            jax.ShapeDtypeStruct((1, 1), jnp.float32),         # scalar loss
        ),
        grid=(pl.cdiv(n_all, tn),),
        in_specs=[
            pl.BlockSpec((2, tn), lambda i: (0, i)),
            pl.BlockSpec((2, tn), lambda i: (0, i)),
            pl.BlockSpec((2, 1), lambda i: (0, 0)),
        ],
        out_specs=(
            pl.BlockSpec((2, tn), lambda i: (0, i)),
            pl.BlockSpec((1, 1), lambda i: (0, 0)),            # resident accumulator
        ),
        compiler_params=pltpu.CompilerParams(dimension_semantics=("arbitrary",)),
    )(a_t, b_t, bias_col)
    return scores_t, loss[0, 0]


# ----------------------------------------------------------------------------
# Forward pass (faithful port of NCE_loss.forward; `device` arg dropped)
# ----------------------------------------------------------------------------
def nce_loss_forward(cFeatures, z, batch_size, n_turns, w, b):
    """w: [2*D, 2] (transposed torch weight), b: [2] or [1, 2]."""
    if n_turns < 3:
        raise ValueError(
            "NCE_loss requires n_turns >= 3: n_turns == 2 gives an empty negative "
            "set and the reference CrossEntropyLoss over it is degenerate.")
    n = batch_size * (n_turns - 1)

    # ---- negative index bookkeeping (host-side NumPy, identical to the reference) ----
    turn_idx = np.arange(0, n_turns - 1)
    base_negs = np.array([np.delete(turn_idx, el) for el in turn_idx]).reshape(-1)
    z_neg_idx = np.concatenate(
        [base_negs + i * (n_turns - 1) for i in range(batch_size)], axis=0
    )                                               # negative row r uses z[z_neg_idx[r]]
    n_neg = int(z_neg_idx.shape[0])                 # == n * (n_turns - 2)

    cFeatures = jnp.asarray(cFeatures, dtype=jnp.float32)
    z = jnp.asarray(z, dtype=jnp.float32)
    w = jnp.asarray(w, dtype=jnp.float32)
    wc = w[:D]                                      # [768, 2]
    wz = w[D:]                                      # [768, 2]

    # ---- heavy projection kernel: one streaming pass over the UNIQUE rows ----
    cp, zp = project(cFeatures, z, wc, wz)          # each [n, 2] f32

    # ---- assemble pos+neg columns from the tiny projections (8 B/row plumbing) ----
    cp_t = cp.T                                     # [2, n]
    zp_t = zp.T
    z_idx = jnp.asarray(z_neg_idx, dtype=jnp.int32)
    # cFeatures.repeat(n_turns-2, 1)  ->  tile the projected columns
    a_t = jnp.concatenate([cp_t, jnp.tile(cp_t, (1, n_turns - 2))], axis=1)  # [2, n+n_neg]
    b_t = jnp.concatenate([zp_t, jnp.take(zp_t, z_idx, axis=1)], axis=1)     # [2, n+n_neg]
    bias_col = jnp.reshape(jnp.asarray(b, dtype=jnp.float32), (2, 1))

    scores_t, loss = scores_and_loss(a_t, b_t, bias_col, n_pos=n, n_neg=n_neg)
    all_scores = scores_t.T                         # [n + n_neg, 2]: cat(pos, neg)

    all_labels = jnp.concatenate(
        [jnp.zeros((n,), dtype=jnp.int32), jnp.ones((n_neg,), dtype=jnp.int32)], axis=0)

    return loss, all_scores, all_labels


if __name__ == "__main__":
    key = jax.random.PRNGKey(0)
    k1, k2, k3, k4 = jax.random.split(key, 4)

    # small shapes consistent with the module (feature dim must be 768);
    # n = 20 rows exercises a 2-step grid with a ragged last projection block.
    batch_size, n_turns = 4, 6
    n_rows = batch_size * (n_turns - 1)             # 20

    cFeatures = jax.random.normal(k1, (n_rows, D), dtype=jnp.float32)
    z = jax.random.normal(k2, (n_rows, D), dtype=jnp.float32)

    # deterministic Linear(1536, 2) parameters (PyTorch-style uniform bounds)
    bound = 1.0 / np.sqrt(2 * D)
    w_torch = jax.random.uniform(k3, (2, 2 * D), jnp.float32, -bound, bound)  # torch [out, in]
    b_torch = jax.random.uniform(k4, (2,), jnp.float32, -bound, bound)
    w = w_torch.T                                   # [2D, 2] for the kernels
    b = b_torch.reshape(1, 2)

    loss, all_scores, all_labels = nce_loss_forward(cFeatures, z, batch_size, n_turns, w, b)
    jax.block_until_ready((loss, all_scores, all_labels))

    n_all = n_rows + n_rows * (n_turns - 2)
    assert all_scores.shape == (n_all, 2)
    assert all_labels.shape == (n_all,)
    assert loss.shape == ()
    assert bool(jnp.isfinite(loss))

    # ---- pure-JAX reference (CrossEntropyLoss semantics of the PyTorch module) ----
    turn_idx = np.arange(0, n_turns - 1)
    base_negs = np.array([np.delete(turn_idx, el) for el in turn_idx]).reshape(-1)
    z_neg_idx = np.concatenate(
        [base_negs + i * (n_turns - 1) for i in range(batch_size)], axis=0)
    pos_emb = jnp.concatenate([cFeatures, z], axis=1)
    neg_emb = jnp.concatenate(
        [jnp.tile(cFeatures, (n_turns - 2, 1)), z[z_neg_idx]], axis=1)
    emb = jnp.concatenate([pos_emb, neg_emb], axis=0)
    ref_scores = jnp.dot(emb, w, precision=jax.lax.Precision.HIGHEST) + b
    lse = jax.nn.logsumexp(ref_scores, axis=-1)
    labels_np = np.concatenate(
        [np.zeros(n_rows, np.int32), np.ones(n_rows * (n_turns - 2), np.int32)])
    ce = lse - ref_scores[jnp.arange(ref_scores.shape[0]), labels_np]
    ref_loss = jnp.mean(ce[:n_rows]) + jnp.mean(ce[n_rows:])

    np.testing.assert_allclose(np.asarray(all_scores), np.asarray(ref_scores),
                               rtol=2e-2, atol=2e-2)
    np.testing.assert_allclose(float(loss), float(ref_loss), rtol=2e-2, atol=2e-2)
    assert np.array_equal(np.asarray(all_labels), labels_np)

    print("KERNEL_OK")
</pallas_src>

<mosaic_0001>
module attributes {stable_mosaic.version = 11 : i64} {
  func.func @_proj_kernel(%arg0: i32, %arg1: memref<16x768xf32, #tpu.memory_space<vmem>>, %arg2: memref<16x768xf32, #tpu.memory_space<vmem>>, %arg3: memref<768x2xf32, #tpu.memory_space<vmem>>, %arg4: memref<768x2xf32, #tpu.memory_space<vmem>>, %arg5: memref<16x2xf32, #tpu.memory_space<vmem>>, %arg6: memref<16x2xf32, #tpu.memory_space<vmem>>) attributes {dimension_semantics = [#tpu.dimension_semantics<parallel>], iteration_bounds = array<i64: 2>, scalar_prefetch = 0 : i64, scratch_operands = 0 : i64, tpu.core_type = #tpu.core_type<tc>, window_params = [{transform_indices = @transform_0, window_bounds = array<i64: 16, 768>}, {transform_indices = @transform_1, window_bounds = array<i64: 16, 768>}, {pipeline_mode = #tpu.pipeline_mode<synchronous>, transform_indices = @transform_2, window_bounds = array<i64: 768, 2>}, {pipeline_mode = #tpu.pipeline_mode<synchronous>, transform_indices = @transform_3, window_bounds = array<i64: 768, 2>}, {transform_indices = @transform_4, window_bounds = array<i64: 16, 2>}, {transform_indices = @transform_5, window_bounds = array<i64: 16, 2>}]} {
    %c0 = arith.constant 0 : index
    %c0_0 = arith.constant 0 : index
    %0 = vector.load %arg1[%c0, %c0_0] : memref<16x768xf32, #tpu.memory_space<vmem>>, vector<16x768xf32>
    %c0_1 = arith.constant 0 : index
    %c0_2 = arith.constant 0 : index
    %1 = vector.load %arg3[%c0_1, %c0_2] : memref<768x2xf32, #tpu.memory_space<vmem>>, vector<768x2xf32>
    %cst = arith.constant dense<0.000000e+00> : vector<16x2xf32>
    %2 = tpu.matmul %0, %1, %cst {dimension_numbers = #tpu.dot_dimension_numbers<[1], [0], [0], [1], [0, 0, 1, 1], [], []>} : vector<16x768xf32>, vector<768x2xf32>, vector<16x2xf32> -> vector<16x2xf32>
    %c0_3 = arith.constant 0 : index
    %c0_4 = arith.constant 0 : index
    %3 = vector.load %arg5[%c0_3, %c0_4] : memref<16x2xf32, #tpu.memory_space<vmem>>, vector<16x2xf32>
    tpu.vector_store %arg5[%c0_3, %c0_4], %2 {strides = array<i32>} : memref<16x2xf32, #tpu.memory_space<vmem>>, vector<16x2xf32>,
    %c0_5 = arith.constant 0 : index
    %c0_6 = arith.constant 0 : index
    %4 = vector.load %arg2[%c0_5, %c0_6] : memref<16x768xf32, #tpu.memory_space<vmem>>, vector<16x768xf32>
    %c0_7 = arith.constant 0 : index
    %c0_8 = arith.constant 0 : index
    %5 = vector.load %arg4[%c0_7, %c0_8] : memref<768x2xf32, #tpu.memory_space<vmem>>, vector<768x2xf32>
    %cst_9 = arith.constant dense<0.000000e+00> : vector<16x2xf32>
    %6 = tpu.matmul %4, %5, %cst_9 {dimension_numbers = #tpu.dot_dimension_numbers<[1], [0], [0], [1], [0, 0, 1, 1], [], []>} : vector<16x768xf32>, vector<768x2xf32>, vector<16x2xf32> -> vector<16x2xf32>
    %c0_10 = arith.constant 0 : index
    %c0_11 = arith.constant 0 : index
    %7 = vector.load %arg6[%c0_10, %c0_11] : memref<16x2xf32, #tpu.memory_space<vmem>>, vector<16x2xf32>
    tpu.vector_store %arg6[%c0_10, %c0_11], %6 {strides = array<i32>} : memref<16x2xf32, #tpu.memory_space<vmem>>, vector<16x2xf32>,
    return
  }
  func.func @transform_0(%arg0: i32) -> (i32, i32) {
    %c0_i32 = arith.constant 0 : i32
    %c0_i32_0 = arith.constant 0 : i32
    return %arg0, %c0_i32 : i32, i32
  }
  func.func @transform_1(%arg0: i32) -> (i32, i32) {
    %c0_i32 = arith.constant 0 : i32
    %c0_i32_0 = arith.constant 0 : i32
    return %arg0, %c0_i32 : i32, i32
  }
  func.func @transform_2(%arg0: i32) -> (i32, i32) {
    %c0_i32 = arith.constant 0 : i32
    %c0_i32_0 = arith.constant 0 : i32
    %c0_i32_1 = arith.constant 0 : i32
    return %c0_i32, %c0_i32_0 : i32, i32
  }
  func.func @transform_3(%arg0: i32) -> (i32, i32) {
    %c0_i32 = arith.constant 0 : i32
    %c0_i32_0 = arith.constant 0 : i32
    %c0_i32_1 = arith.constant 0 : i32
    return %c0_i32, %c0_i32_0 : i32, i32
  }
  func.func @transform_4(%arg0: i32) -> (i32, i32) {
    %c0_i32 = arith.constant 0 : i32
    %c0_i32_0 = arith.constant 0 : i32
    return %arg0, %c0_i32 : i32, i32
  }
  func.func @transform_5(%arg0: i32) -> (i32, i32) {
    %c0_i32 = arith.constant 0 : i32
    %c0_i32_0 = arith.constant 0 : i32
    return %arg0, %c0_i32 : i32, i32
  }
}

</mosaic_0001>

<bundles_post_ra>
// kernel: tpu_custom_call.1
= control target key start
LH: loop header
LB: loop body
LE: loop exit
PB: predicated region body
PF: predicated region fallthrough
CT: control target
= control target key end

     0   :  { %s2027_s18 = smov 0   ;;  %s2029_s19 = smov 0   ;;  %s2769_s0 = inlined_call_operand.vmem [shape: f32[20,768], index: 0, kind: input, shape index: {}]   ;;  %s2770_s1 = inlined_call_operand.vmem [shape: f32[20,768], index: 1, kind: input, shape index: {}]   ;;  %s2771_s2 = inlined_call_operand.vmem [shape: f32[768,2], index: 2, kind: input, shape index: {}]   ;;  %s2772_s3 = inlined_call_operand.vmem [shape: f32[768,2], index: 3, kind: input, shape index: {}]   ;;  %s2773_s4 = inlined_call_operand.vmem [shape: f32[20,2], index: 4, kind: output, shape index: {0}]   ;;  %s2774_s5 = inlined_call_operand.vmem [shape: f32[20,2], index: 5, kind: output, shape index: {1}]  }
   0x1   :  { %s2031_s20 = smov 0  }
   0x2 LB: > { %s2040_s21 = sadd.s32 4294967295, %s1931_s20   ;;  %s2042_s22 = sadd.s32 1, %s1931_s20   ;;  %s1931_s20 = sphi %s2031_s20, %s2778_s20   ;;  %s1927_s19 = sphi %s2029_s19, %s2777_s19   ;;  %s1923_s18 = sphi %s2027_s18, %s2776_s18  }
   0x3   : > { %s114_s23 = ssub.s32 %s1931_s20, %s2042_s22  ;;  %s117_s24 = sadd.s32 1, %s1927_s19 }
   0x4   : > { %p115_p0 = scmp.eq.s32.totalorder %s114_s23, 0  ;;  %p127_p1 = scmp.ne.s32.totalorder %s1927_s19, %s1923_s18 }
   0x5   : > { %p128_p2 = scmp.eq.s32.totalorder %s2040_s21, 1  ;;  %p1419_p3 = scmp.ge.s32.totalorder %s1931_s20, 1 }
   0x6   : > { %s2050_s25 = scalar_select %p115_p0, %s1927_s19, %s117_s24  }
   0x7   : > { %p2052_p4 = por %p128_p2, %p127_p1  ;;  %p224_p5 = scmp.lt.s32.totalorder %s1931_s20, 3 }
   0x9   : > { %p225_p6 = pnand %p1419_p3, %p224_p5 }
   0xa   : > { %s2141_s24 = sshll.u32 (!%p225_p6), %s2040_s21, 1  ;;  %s263_s16 = sand.u32 (!%p225_p6), 1, %s1923_s18  }
   0xb   : > { %228 = sbr.rel (%p225_p6) target bundleno = 412 (0x19c), region = 36  ;;  %p278_p7 = scmp.lt.s32.totalorder (!%p225_p6), %s2141_s24, 2 }
   0xc   : > { %s2681_s17 = sshll.u32 (!%p225_p6), %s263_s16, 4 }
   0xd   : > { %s2691_s18 = scalar_lea.vmem (!%p225_p6), [#allocation3], %s2681_s17  }
  0x10   : > { %v359_v0 = vld [vmem:[%s2771_s2 + $0xf8] sm:$0xff]  ;;  %v358_v4 = vld [vmem:[%s2771_s2 + $0xf0] sm:$0xff]  ;;  %v357_v8 = vld [vmem:[%s2771_s2 + $0xe8] sm:$0xff]  ;;  %s2189_s12 = scalar_select %p278_p7, %s2141_s24, 2  ;;  %vm649_vm0 = vcmask 15360  }
  0x11   : > { %v391_v1 = vld [vmem:[%s2771_s2 + $0x1f8] sm:$0xff]  ;;  %1464 = vmatprep.subr.mxu0 %v359_v0  ;;  %v390_v5 = vld [vmem:[%s2771_s2 + $0x1f0] sm:$0xff]  ;;  %v389_v9 = vld [vmem:[%s2771_s2 + $0x1e8] sm:$0xff]  ;;  %s999_s20 = ssub.s32 (%p2052_p4), 3, %s2141_s24  ;;  %s1458_s27 = sshll.u32 (%p2052_p4), %s2040_s21, 4 }
  0x12   : > { %v343_v2 = vld [vmem:[%s2771_s2 + $0x78] sm:$0xff]  ;;  %1502 = vmatprep.subr.mxu1 %v391_v1  ;;  %v342_v6 = vld [vmem:[%s2771_s2 + $0x70] sm:$0xff]  ;;  %v341_v10 = vld [vmem:[%s2771_s2 + $0x68] sm:$0xff]  ;;  %s1692_s11 = smul.u32 48, %s2189_s12  ;;  %p1000_p8 = scmp.lt.s32.totalorder (%p2052_p4), %s999_s20, 2 }
  0x13   : > { %v375_v3 = vld [vmem:[%s2771_s2 + $0x178] sm:$0xff]  ;;  %1465 = vmatpush3.msra.mxu0 %v343_v2  ;;  %v374_v7 = vld [vmem:[%s2771_s2 + $0x170] sm:$0xff]  ;;  %v373_v11 = vld [vmem:[%s2771_s2 + $0x168] sm:$0xff]  ;;  %s2704_s30 = scalar_lea.vmem (%p2052_p4), %s2773_s4, %s1458_s27  }
  0x14   : > { %1503 = vmatpush3.msra.mxu1 %v375_v3  ;;  %1466 = vmatprep.subr.mxu0 %v358_v4  ;;  %v356_v12 = vld [vmem:[%s2771_s2 + $0xe0] sm:$0xff]  ;;  %v355_v16 = vld [vmem:[%s2771_s2 + $0xd8] sm:$0xff]  ;;  %v354_v20 = vld [vmem:[%s2771_s2 + $0xd0] sm:$0xff]  ;;  %s2245_s15 = scalar_lea.vmem %s2769_s0, %s1692_s11  ;;  %s2464_s23 = scalar_lea.vmem %s2770_s1, %s1692_s11 }
  0x15   : > { %1504 = vmatprep.subr.mxu1 %v390_v5  ;;  %1467 = vmatpush3.msra.mxu0 %v342_v6  ;;  %v388_v13 = vld [vmem:[%s2771_s2 + $0x1e0] sm:$0xff]  ;;  %v387_v17 = vld [vmem:[%s2771_s2 + $0x1d8] sm:$0xff]  ;;  %v386_v21 = vld [vmem:[%s2771_s2 + $0x1d0] sm:$0xff] }
  0x16   : > { %1505 = vmatpush3.msra.mxu1 %v374_v7  ;;  %1468 = vmatprep.subr.mxu0 %v357_v8  ;;  %v340_v14 = vld [vmem:[%s2771_s2 + $0x60] sm:$0xff]  ;;  %v339_v18 = vld [vmem:[%s2771_s2 + $0x58] sm:$0xff]  ;;  %v338_v22 = vld [vmem:[%s2771_s2 + $0x50] sm:$0xff] }
  0x17   : > { %1506 = vmatprep.subr.mxu1 %v389_v9  ;;  %v372_v15 = vld [vmem:[%s2771_s2 + $0x160] sm:$0xff]  ;;  %1469 = vmatpush3.msra.mxu0 %v341_v10  ;;  %v371_v19 = vld [vmem:[%s2771_s2 + $0x158] sm:$0xff]  ;;  %v370_v23 = vld [vmem:[%s2771_s2 + $0x150] sm:$0xff] }
  0x18   : > { %1507 = vmatpush3.msra.mxu1 %v373_v11  ;;  %1470 = vmatprep.subr.mxu0 %v356_v12  ;;  %v353_v24 = vld [vmem:[%s2771_s2 + $0xc8] sm:$0xff]  ;;  %v352_v28 = vld [vmem:[%s2771_s2 + $0xc0] sm:$0xff]  ;;  %v351_v32 = vld [vmem:[%s2771_s2 + $0xb8] sm:$0xff] }
  0x19   : > { %1508 = vmatprep.subr.mxu1 %v388_v13  ;;  %1471 = vmatpush3.msra.mxu0 %v340_v14  ;;  %v385_v25 = vld [vmem:[%s2771_s2 + $0x1c8] sm:$0xff]  ;;  %v384_v29 = vld [vmem:[%s2771_s2 + $0x1c0] sm:$0xff]  ;;  %v383_v33 = vld [vmem:[%s2771_s2 + $0x1b8] sm:$0xff] }
  0x1a   : > { %1509 = vmatpush3.msra.mxu1 %v372_v15  ;;  %1472 = vmatprep.subr.mxu0 %v355_v16  ;;  %v337_v26 = vld [vmem:[%s2771_s2 + $0x48] sm:$0xff]  ;;  %v336_v30 = vld [vmem:[%s2771_s2 + $0x40] sm:$0xff]  ;;  %v335_v34 = vld [vmem:[%s2771_s2 + $0x38] sm:$0xff] }
  0x1b   : > { %1510 = vmatprep.subr.mxu1 %v387_v17  ;;  %1473 = vmatpush3.msra.mxu0 %v339_v18  ;;  %v369_v27 = vld [vmem:[%s2771_s2 + $0x148] sm:$0xff]  ;;  %v368_v31 = vld [vmem:[%s2771_s2 + $0x140] sm:$0xff]  ;;  %v367_v35 = vld [vmem:[%s2771_s2 + $0x138] sm:$0xff] }
  0x1c   : > { %1511 = vmatpush3.msra.mxu1 %v371_v19  ;;  %1474 = vmatprep.subr.mxu0 %v354_v20  ;;  %v350_v36 = vld [vmem:[%s2771_s2 + $0xb0] sm:$0xff]  ;;  %v349_v40 = vld [vmem:[%s2771_s2 + $0xa8] sm:$0xff]  ;;  %v348_v44 = vld [vmem:[%s2771_s2 + $0xa0] sm:$0xff] }
  0x1d   : > { %1512 = vmatprep.subr.mxu1 %v386_v21  ;;  %1475 = vmatpush3.msra.mxu0 %v338_v22  ;;  %v382_v37 = vld [vmem:[%s2771_s2 + $0x1b0] sm:$0xff]  ;;  %v381_v41 = vld [vmem:[%s2771_s2 + $0x1a8] sm:$0xff]  ;;  %v380_v45 = vld [vmem:[%s2771_s2 + $0x1a0] sm:$0xff] }
  0x1e   : > { %1513 = vmatpush3.msra.mxu1 %v370_v23  ;;  %1476 = vmatprep.subr.mxu0 %v353_v24  ;;  %v334_v38 = vld [vmem:[%s2771_s2 + $0x30] sm:$0xff]  ;;  %v333_v42 = vld [vmem:[%s2771_s2 + $0x28] sm:$0xff]  ;;  %v332_v46 = vld [vmem:[%s2771_s2 + $0x20] sm:$0xff] }
  0x1f   : > { %1514 = vmatprep.subr.mxu1 %v385_v25  ;;  %1477 = vmatpush3.msra.mxu0 %v337_v26  ;;  %v366_v39 = vld [vmem:[%s2771_s2 + $0x130] sm:$0xff]  ;;  %v365_v43 = vld [vmem:[%s2771_s2 + $0x128] sm:$0xff]  ;;  %v364_v47 = vld [vmem:[%s2771_s2 + $0x120] sm:$0xff] }
  0x20   : > { %1515 = vmatpush3.msra.mxu1 %v369_v27  ;;  %1478 = vmatprep.subr.mxu0 %v352_v28  ;;  %v347_v48 = vld [vmem:[%s2771_s2 + $0x98] sm:$0xff]  ;;  %v346_v52 = vld [vmem:[%s2771_s2 + $0x90] sm:$0xff]  ;;  %v345_v56 = vld [vmem:[%s2771_s2 + $0x88] sm:$0xff] }
  0x21   : > { %1516 = vmatprep.subr.mxu1 %v384_v29  ;;  %1479 = vmatpush3.msra.mxu0 %v336_v30  ;;  %v379_v49 = vld [vmem:[%s2771_s2 + $0x198] sm:$0xff]  ;;  %v378_v53 = vld [vmem:[%s2771_s2 + $0x190] sm:$0xff]  ;;  %v377_v57 = vld [vmem:[%s2771_s2 + $0x188] sm:$0xff] }
  0x22   : > { %1517 = vmatpush3.msra.mxu1 %v368_v31  ;;  %1480 = vmatprep.subr.mxu0 %v351_v32  ;;  %v331_v50 = vld [vmem:[%s2771_s2 + $0x18] sm:$0xff]  ;;  %v330_v54 = vld [vmem:[%s2771_s2 + $0x10] sm:$0xff]  ;;  %v329_v58 = vld [vmem:[%s2771_s2 + $0x8] sm:$0xff] }
  0x23   : > { %1518 = vmatprep.subr.mxu1 %v383_v33  ;;  %1481 = vmatpush3.msra.mxu0 %v335_v34  ;;  %v363_v51 = vld [vmem:[%s2771_s2 + $0x118] sm:$0xff]  ;;  %v362_v55 = vld [vmem:[%s2771_s2 + $0x110] sm:$0xff]  ;;  %v361_v59 = vld [vmem:[%s2771_s2 + $0x108] sm:$0xff] }
  0x24   : > { %1519 = vmatpush3.msra.mxu1 %v367_v35  ;;  %1482 = vmatprep.subr.mxu0 %v350_v36  ;;  %v344_v60 = vld [vmem:[%s2771_s2 + $0x80] sm:$0xff]  ;;  %v317_v63 = vld [vmem:[%s2245_s15 + $0x8] sm:$0xff]  ;;  %v319_v1 = vld [vmem:[%s2245_s15 + $0x18] sm:$0xff] }
  0x25   : > { %1520 = vmatprep.subr.mxu1 %v382_v37  ;;  %1483 = vmatpush3.msra.mxu0 %v334_v38  ;;  %v376_v61 = vld [vmem:[%s2771_s2 + $0x180] sm:$0xff]  ;;  %v318_v3 = vld [vmem:[%s2245_s15 + $0x10] sm:$0xff]  ;;  %v423_v4 = vld [vmem:[%s2771_s2 + $0x2f8] sm:$0xff] }
  0x26   : > { %1521 = vmatpush3.msra.mxu1 %v366_v39  ;;  %1484 = vmatprep.subr.mxu0 %v349_v40  ;;  %v328_v62 = vld [vmem:[%s2771_s2] sm:$0xff]  ;;  %v695_v5 = vld [vmem:[%s2772_s3 + $0xf8] sm:$0xff]  ;;  %v422_v8 = vld [vmem:[%s2771_s2 + $0x2f0] sm:$0xff] }
  0x27   : > { %1522 = vmatprep.subr.mxu1 %v381_v41  ;;  %1485 = vmatpush3.msra.mxu0 %v333_v42  ;;  %v360_v0 = vld [vmem:[%s2771_s2 + $0x100] sm:$0xff]  ;;  %v407_v6 = vld [vmem:[%s2771_s2 + $0x278] sm:$0xff]  ;;  %v694_v9 = vld [vmem:[%s2772_s3 + $0xf0] sm:$0xff] }
  0x28   : > { %1523 = vmatpush3.msra.mxu1 %v365_v43  ;;  %1486 = vmatprep.subr.mxu0 %v348_v44  ;;  %v316_v2 = vld [vmem:[%s2245_s15] sm:$0xff]  ;;  %v679_v7 = vld [vmem:[%s2772_s3 + $0x78] sm:$0xff]  ;;  %v406_v10 = vld [vmem:[%s2771_s2 + $0x270] sm:$0xff] }
  0x29   : > { %1524 = vmatprep.subr.mxu1 %v380_v45  ;;  %1487 = vmatpush3.msra.mxu0 %v332_v46  ;;  %v678_v11 = vld [vmem:[%s2772_s3 + $0x70] sm:$0xff]  ;;  %v421_v12 = vld [vmem:[%s2771_s2 + $0x2e8] sm:$0xff]  ;;  %v420_v16 = vld [vmem:[%s2771_s2 + $0x2e0] sm:$0xff] }
  0x2a   : > { %1525 = vmatpush3.msra.mxu1 %v364_v47  ;;  %1488 = vmatprep.subr.mxu0 %v347_v48  ;;  %v693_v13 = vld [vmem:[%s2772_s3 + $0xe8] sm:$0xff]  ;;  %v692_v17 = vld [vmem:[%s2772_s3 + $0xe0] sm:$0xff]  ;;  %v419_v20 = vld [vmem:[%s2771_s2 + $0x2d8] sm:$0xff] }
  0x2b   : > { %1526 = vmatprep.subr.mxu1 %v379_v49  ;;  %1489 = vmatpush3.msra.mxu0 %v331_v50  ;;  %v405_v14 = vld [vmem:[%s2771_s2 + $0x268] sm:$0xff]  ;;  %v404_v18 = vld [vmem:[%s2771_s2 + $0x260] sm:$0xff]  ;;  %v691_v21 = vld [vmem:[%s2772_s3 + $0xd8] sm:$0xff] }
  0x2c   : > { %1527 = vmatpush3.msra.mxu1 %v363_v51  ;;  %1490 = vmatprep.subr.mxu0 %v346_v52  ;;  %v677_v15 = vld [vmem:[%s2772_s3 + $0x68] sm:$0xff]  ;;  %v676_v19 = vld [vmem:[%s2772_s3 + $0x60] sm:$0xff]  ;;  %v403_v22 = vld [vmem:[%s2771_s2 + $0x258] sm:$0xff] }
  0x2d   : > { %1528 = vmatprep.subr.mxu1 %v378_v53  ;;  %1491 = vmatpush3.msra.mxu0 %v330_v54  ;;  %v675_v23 = vld [vmem:[%s2772_s3 + $0x58] sm:$0xff]  ;;  %v418_v24 = vld [vmem:[%s2771_s2 + $0x2d0] sm:$0xff]  ;;  %v417_v28 = vld [vmem:[%s2771_s2 + $0x2c8] sm:$0xff] }
  0x2e   : > { %1529 = vmatpush3.msra.mxu1 %v362_v55  ;;  %1492 = vmatprep.subr.mxu0 %v345_v56  ;;  %v690_v25 = vld [vmem:[%s2772_s3 + $0xd0] sm:$0xff]  ;;  %v689_v29 = vld [vmem:[%s2772_s3 + $0xc8] sm:$0xff]  ;;  %v416_v32 = vld [vmem:[%s2771_s2 + $0x2c0] sm:$0xff] }
  0x2f   : > { %1530 = vmatprep.subr.mxu1 %v377_v57  ;;  %1493 = vmatpush3.msra.mxu0 %v329_v58  ;;  %v402_v26 = vld [vmem:[%s2771_s2 + $0x250] sm:$0xff]  ;;  %v401_v30 = vld [vmem:[%s2771_s2 + $0x248] sm:$0xff]  ;;  %v688_v33 = vld [vmem:[%s2772_s3 + $0xc0] sm:$0xff] }
  0x30   : > { %1531 = vmatpush3.msra.mxu1 %v361_v59  ;;  %1494 = vmatprep.subr.mxu0 %v344_v60  ;;  %v674_v27 = vld [vmem:[%s2772_s3 + $0x50] sm:$0xff]  ;;  %v673_v31 = vld [vmem:[%s2772_s3 + $0x48] sm:$0xff]  ;;  %v400_v34 = vld [vmem:[%s2771_s2 + $0x240] sm:$0xff] }
  0x31   : > { %1532 = vmatprep.subr.mxu1 %v376_v61  ;;  %1495 = vmatpush3.msra.mxu0 %v328_v62  ;;  %v672_v35 = vld [vmem:[%s2772_s3 + $0x40] sm:$0xff]  ;;  %v415_v36 = vld [vmem:[%s2771_s2 + $0x2b8] sm:$0xff]  ;;  %v414_v40 = vld [vmem:[%s2771_s2 + $0x2b0] sm:$0xff] }
  0x32   : > { %488 = vmatprep.mubr.f32.mxu0 %v317_v63  ;;  %1533 = vmatpush3.msra.mxu1 %v360_v0  ;;  %v687_v37 = vld [vmem:[%s2772_s3 + $0xb8] sm:$0xff]  ;;  %v686_v41 = vld [vmem:[%s2772_s3 + $0xb0] sm:$0xff]  ;;  %v413_v44 = vld [vmem:[%s2771_s2 + $0x2a8] sm:$0xff] }
  0x33   : > { %563 = vmatprep.mubr.f32.mxu1 %v319_v1  ;;  %489 = vmatmul.mubr.f32.vlgmr.msra.gmra.mxu0 %v316_v2  ;;  %v399_v38 = vld [vmem:[%s2771_s2 + $0x238] sm:$0xff]  ;;  %v398_v42 = vld [vmem:[%s2771_s2 + $0x230] sm:$0xff]  ;;  %v685_v45 = vld [vmem:[%s2772_s3 + $0xa8] sm:$0xff] }
  0x34   : > { %564 = vmatmul.mubr.f32.vlgmr.msra.gmra.mxu1 %v318_v3  ;;  %1540 = vmatprep.subr.mxu0 %v423_v4  ;;  %v671_v39 = vld [vmem:[%s2772_s3 + $0x38] sm:$0xff]  ;;  %v670_v43 = vld [vmem:[%s2772_s3 + $0x30] sm:$0xff]  ;;  %v397_v46 = vld [vmem:[%s2771_s2 + $0x228] sm:$0xff] }
  0x35   : > { %1578 = vmatprep.subr.mxu1 %v695_v5  ;;  %1541 = vmatpush3.msra.mxu0 %v407_v6  ;;  %v669_v47 = vld [vmem:[%s2772_s3 + $0x28] sm:$0xff]  ;;  %v412_v48 = vld [vmem:[%s2771_s2 + $0x2a0] sm:$0xff]  ;;  %v411_v52 = vld [vmem:[%s2771_s2 + $0x298] sm:$0xff] }
  0x36   : > { %1579 = vmatpush3.msra.mxu1 %v679_v7  ;;  %1542 = vmatprep.subr.mxu0 %v422_v8  ;;  %v684_v49 = vld [vmem:[%s2772_s3 + $0xa0] sm:$0xff]  ;;  %v683_v53 = vld [vmem:[%s2772_s3 + $0x98] sm:$0xff]  ;;  %v325_v57 = vld [vmem:[%s2245_s15 + $0x48] sm:$0xff] }
  0x37   : > { %1580 = vmatprep.subr.mxu1 %v694_v9  ;;  %1543 = vmatpush3.msra.mxu0 %v406_v10  ;;  %v396_v50 = vld [vmem:[%s2771_s2 + $0x220] sm:$0xff]  ;;  %v395_v54 = vld [vmem:[%s2771_s2 + $0x218] sm:$0xff]  ;;  %v410_v58 = vld [vmem:[%s2771_s2 + $0x290] sm:$0xff] }
  0x38   : > { %1581 = vmatpush3.msra.mxu1 %v678_v11  ;;  %1544 = vmatprep.subr.mxu0 %v421_v12  ;;  %v668_v51 = vld [vmem:[%s2772_s3 + $0x20] sm:$0xff]  ;;  %v667_v55 = vld [vmem:[%s2772_s3 + $0x18] sm:$0xff]  ;;  %v682_v59 = vld [vmem:[%s2772_s3 + $0x90] sm:$0xff] }
  0x39   : > { %1582 = vmatprep.subr.mxu1 %v693_v13  ;;  %1545 = vmatpush3.msra.mxu0 %v405_v14  ;;  %v323_v56 = vld [vmem:[%s2245_s15 + $0x38] sm:$0xff]  ;;  %v322_v60 = vld [vmem:[%s2245_s15 + $0x30] sm:$0xff]  ;;  %v324_v61 = vld [vmem:[%s2245_s15 + $0x40] sm:$0xff] }
  0x3a   : > { %1583 = vmatpush3.msra.mxu1 %v677_v15  ;;  %1546 = vmatprep.subr.mxu0 %v420_v16  ;;  %v394_v62 = vld [vmem:[%s2771_s2 + $0x210] sm:$0xff]  ;;  %v409_v0 = vld [vmem:[%s2771_s2 + $0x288] sm:$0xff]  ;;  %v408_v4 = vld [vmem:[%s2771_s2 + $0x280] sm:$0xff] }
  0x3b   : > { %1584 = vmatprep.subr.mxu1 %v692_v17  ;;  %1547 = vmatpush3.msra.mxu0 %v404_v18  ;;  %v666_v63 = vld [vmem:[%s2772_s3 + $0x10] sm:$0xff]  ;;  %v681_v1 = vld [vmem:[%s2772_s3 + $0x88] sm:$0xff]  ;;  %v680_v5 = vld [vmem:[%s2772_s3 + $0x80] sm:$0xff] }
  0x3c   : > { %1585 = vmatpush3.msra.mxu1 %v676_v19  ;;  %1548 = vmatprep.subr.mxu0 %v419_v20  ;;  %v393_v2 = vld [vmem:[%s2771_s2 + $0x208] sm:$0xff]  ;;  %v392_v6 = vld [vmem:[%s2771_s2 + $0x200] sm:$0xff]  ;;  %v727_v11 = vld [vmem:[%s2772_s3 + $0x1f8] sm:$0xff] }
  0x3d   : > { %1586 = vmatprep.subr.mxu1 %v691_v21  ;;  %1549 = vmatpush3.msra.mxu0 %v403_v22  ;;  %v665_v3 = vld [vmem:[%s2772_s3 + $0x8] sm:$0xff]  ;;  %v664_v8 = vld [vmem:[%s2772_s3] sm:$0xff]  ;;  %v759_v12 = vld [vmem:[%s2772_s3 + $0x2f8] sm:$0xff] }
  0x3e   : > { %1587 = vmatpush3.msra.mxu1 %v675_v23  ;;  %1550 = vmatprep.subr.mxu0 %v418_v24  ;;  %v321_v7 = vld [vmem:[%s2245_s15 + $0x28] sm:$0xff]  ;;  %v320_v9 = vld [vmem:[%s2245_s15 + $0x20] sm:$0xff]  ;;  %v711_v14 = vld [vmem:[%s2772_s3 + $0x178] sm:$0xff] }
  0x3f   : > { %1588 = vmatprep.subr.mxu1 %v690_v25  ;;  %1551 = vmatpush3.msra.mxu0 %v402_v26  ;;  %v653_v10 = vld [vmem:[%s2464_s23 + $0x8] sm:$0xff]  ;;  %v652_v13 = vld [vmem:[%s2464_s23] sm:$0xff]  ;;  %v743_v15 = vld [vmem:[%s2772_s3 + $0x278] sm:$0xff] }
  0x40   : > { %1589 = vmatpush3.msra.mxu1 %v674_v27  ;;  %1552 = vmatprep.subr.mxu0 %v417_v28  ;;  %v726_v16 = vld [vmem:[%s2772_s3 + $0x1f0] sm:$0xff]  ;;  %v327_v18 = vld [vmem:[%s2245_s15 + $0x58] sm:$0xff]  ;;  %v725_v22 = vld [vmem:[%s2772_s3 + $0x1e8] sm:$0xff] }
  0x41   : > { %1590 = vmatprep.subr.mxu1 %v689_v29  ;;  %1553 = vmatpush3.msra.mxu0 %v401_v30  ;;  %v758_v17 = vld [vmem:[%s2772_s3 + $0x2f0] sm:$0xff]  ;;  %v757_v23 = vld [vmem:[%s2772_s3 + $0x2e8] sm:$0xff]  ;;  %v724_v26 = vld [vmem:[%s2772_s3 + $0x1e0] sm:$0xff] }
  0x42   : > { %1591 = vmatpush3.msra.mxu1 %v673_v31  ;;  %1554 = vmatprep.subr.mxu0 %v416_v32  ;;  %v710_v19 = vld [vmem:[%s2772_s3 + $0x170] sm:$0xff]  ;;  %v709_v24 = vld [vmem:[%s2772_s3 + $0x168] sm:$0xff]  ;;  %v756_v27 = vld [vmem:[%s2772_s3 + $0x2e0] sm:$0xff] }
  0x43   : > { %1592 = vmatprep.subr.mxu1 %v688_v33  ;;  %1555 = vmatpush3.msra.mxu0 %v400_v34  ;;  %v742_v20 = vld [vmem:[%s2772_s3 + $0x270] sm:$0xff]  ;;  %v741_v25 = vld [vmem:[%s2772_s3 + $0x268] sm:$0xff]  ;;  %v708_v28 = vld [vmem:[%s2772_s3 + $0x160] sm:$0xff] }
  0x44   : > { %1593 = vmatpush3.msra.mxu1 %v672_v35  ;;  %1556 = vmatprep.subr.mxu0 %v415_v36  ;;  %v326_v21 = vld [vmem:[%s2245_s15 + $0x50] sm:$0xff]  ;;  %v740_v29 = vld [vmem:[%s2772_s3 + $0x260] sm:$0xff]  ;;  %v723_v30 = vld [vmem:[%s2772_s3 + $0x1d8] sm:$0xff] }
  0x45   : > { %1594 = vmatprep.subr.mxu1 %v687_v37  ;;  %1557 = vmatpush3.msra.mxu0 %v399_v38  ;;  %v755_v31 = vld [vmem:[%s2772_s3 + $0x2d8] sm:$0xff]  ;;  %v722_v34 = vld [vmem:[%s2772_s3 + $0x1d0] sm:$0xff]  ;;  %v721_v38 = vld [vmem:[%s2772_s3 + $0x1c8] sm:$0xff] }
  0x46   : > { %1595 = vmatpush3.msra.mxu1 %v671_v39  ;;  %1558 = vmatprep.subr.mxu0 %v414_v40  ;;  %v707_v32 = vld [vmem:[%s2772_s3 + $0x158] sm:$0xff]  ;;  %v754_v35 = vld [vmem:[%s2772_s3 + $0x2d0] sm:$0xff]  ;;  %v753_v39 = vld [vmem:[%s2772_s3 + $0x2c8] sm:$0xff] }
  0x47   : > { %1596 = vmatprep.subr.mxu1 %v686_v41  ;;  %1559 = vmatpush3.msra.mxu0 %v398_v42  ;;  %v739_v33 = vld [vmem:[%s2772_s3 + $0x258] sm:$0xff]  ;;  %v706_v36 = vld [vmem:[%s2772_s3 + $0x150] sm:$0xff]  ;;  %v705_v40 = vld [vmem:[%s2772_s3 + $0x148] sm:$0xff] }
  0x48   : > { %1597 = vmatpush3.msra.mxu1 %v670_v43  ;;  %1560 = vmatprep.subr.mxu0 %v413_v44  ;;  %v738_v37 = vld [vmem:[%s2772_s3 + $0x250] sm:$0xff]  ;;  %v737_v41 = vld [vmem:[%s2772_s3 + $0x248] sm:$0xff]  ;;  %v720_v42 = vld [vmem:[%s2772_s3 + $0x1c0] sm:$0xff] }
  0x49   : > { %1598 = vmatprep.subr.mxu1 %v685_v45  ;;  %1561 = vmatpush3.msra.mxu0 %v397_v46  ;;  %v752_v43 = vld [vmem:[%s2772_s3 + $0x2c0] sm:$0xff]  ;;  %v719_v46 = vld [vmem:[%s2772_s3 + $0x1b8] sm:$0xff] }
  0x4a   : > { %1599 = vmatpush3.msra.mxu1 %v669_v47  ;;  %1562 = vmatprep.subr.mxu0 %v412_v48  ;;  %v704_v44 = vld [vmem:[%s2772_s3 + $0x140] sm:$0xff]  ;;  %v751_v47 = vld [vmem:[%s2772_s3 + $0x2b8] sm:$0xff] }
  0x4b   : > { %1600 = vmatprep.subr.mxu1 %v684_v49  ;;  %1563 = vmatpush3.msra.mxu0 %v396_v50  ;;  %v736_v45 = vld [vmem:[%s2772_s3 + $0x240] sm:$0xff]  ;;  %v703_v48 = vld [vmem:[%s2772_s3 + $0x138] sm:$0xff]  ;;  %v718_v50 = vld [vmem:[%s2772_s3 + $0x1b0] sm:$0xff] }
  0x4c   : > { %1601 = vmatpush3.msra.mxu1 %v668_v51  ;;  %1564 = vmatprep.subr.mxu0 %v411_v52  ;;  %v735_v49 = vld [vmem:[%s2772_s3 + $0x238] sm:$0xff]  ;;  %v750_v51 = vld [vmem:[%s2772_s3 + $0x2b0] sm:$0xff] }
  0x4d   : > { %1602 = vmatprep.subr.mxu1 %v683_v53  ;;  %1565 = vmatpush3.msra.mxu0 %v395_v54  ;;  %v702_v52 = vld [vmem:[%s2772_s3 + $0x130] sm:$0xff]  ;;  %v717_v54 = vld [vmem:[%s2772_s3 + $0x1a8] sm:$0xff] }
  0x4e   : > { %1603 = vmatpush3.msra.mxu1 %v667_v55  ;;  %493 = vmatprep.mubr.f32.mxu0 %v323_v56  ;;  %v734_v53 = vld [vmem:[%s2772_s3 + $0x230] sm:$0xff]  ;;  %v749_v55 = vld [vmem:[%s2772_s3 + $0x2a8] sm:$0xff] }
  0x4f   : > { %568 = vmatprep.mubr.f32.mxu1 %v325_v57  ;;  %1566 = vmatprep.subr.mxu0 %v410_v58  ;;  %v701_v56 = vld [vmem:[%s2772_s3 + $0x128] sm:$0xff]  ;;  %v716_v58 = vld [vmem:[%s2772_s3 + $0x1a0] sm:$0xff] }
  0x50   : > { %1604 = vmatprep.subr.mxu1 %v682_v59  ;;  %494 = vmatmul.mubr.f32.gmra.mxu0 %v322_v60  ;;  %v733_v57 = vld [vmem:[%s2772_s3 + $0x228] sm:$0xff]  ;;  %v748_v59 = vld [vmem:[%s2772_s3 + $0x2a0] sm:$0xff] }
  0x51   : > { %569 = vmatmul.mubr.f32.gmra.mxu1 %v324_v61  ;;  %1567 = vmatpush3.msra.mxu0 %v394_v62  ;;  %v700_v60 = vld [vmem:[%s2772_s3 + $0x120] sm:$0xff]  ;;  %v715_v62 = vld [vmem:[%s2772_s3 + $0x198] sm:$0xff] }
  0x52   : > { %1605 = vmatpush3.msra.mxu1 %v666_v63  ;;  %1568 = vmatprep.subr.mxu0 %v409_v0  ;;  %v732_v61 = vld [vmem:[%s2772_s3 + $0x220] sm:$0xff]  ;;  %v747_v63 = vld [vmem:[%s2772_s3 + $0x298] sm:$0xff] }
  0x53   : > { %1606 = vmatprep.subr.mxu1 %v681_v1  ;;  %1569 = vmatpush3.msra.mxu0 %v393_v2  ;;  %v699_v0 = vld [vmem:[%s2772_s3 + $0x118] sm:$0xff]  ;;  %v714_v2 = vld [vmem:[%s2772_s3 + $0x190] sm:$0xff] }
  0x54   : > { %1607 = vmatpush3.msra.mxu1 %v665_v3  ;;  %1570 = vmatprep.subr.mxu0 %v408_v4  ;;  %v731_v1 = vld [vmem:[%s2772_s3 + $0x218] sm:$0xff]  ;;  %v746_v3 = vld [vmem:[%s2772_s3 + $0x290] sm:$0xff] }
  0x55   : > { %1608 = vmatprep.subr.mxu1 %v680_v5  ;;  %1571 = vmatpush3.msra.mxu0 %v392_v6  ;;  %v659_v4 = vld [vmem:[%s2464_s23 + $0x38] sm:$0xff]  ;;  %v698_v5 = vld [vmem:[%s2772_s3 + $0x110] sm:$0xff] }
  0x56   : > { %638 = vmatprep.mubr.f32.mxu0 %v321_v7  ;;  %1609 = vmatpush3.msra.mxu1 %v664_v8  ;;  %v730_v6 = vld [vmem:[%s2772_s3 + $0x210] sm:$0xff]  ;;  %v713_v7 = vld [vmem:[%s2772_s3 + $0x188] sm:$0xff] }
  0x57   : > { %639 = vmatmul.mubr.f32.vlgmr.msra.gmra.mxu0 %v320_v9  ;;  %824 = vmatprep.mubr.f32.mxu1 %v653_v10  ;;  %v658_v8 = vld [vmem:[%s2464_s23 + $0x30] sm:$0xff]  ;;  %v745_v9 = vld [vmem:[%s2772_s3 + $0x288] sm:$0xff] }
  0x58   : > { %1616 = vmatprep.subr.mxu0 %v727_v11  ;;  %1654 = vmatprep.subr.mxu1 %v759_v12  ;;  %v697_v10 = vld [vmem:[%s2772_s3 + $0x108] sm:$0xff]  ;;  %v712_v12 = vld [vmem:[%s2772_s3 + $0x180] sm:$0xff] }
  0x59   : > { %825 = vmatmul.mubr.f32.vlgmr.msra.gmra.mxu1 %v652_v13  ;;  %1617 = vmatpush3.msra.mxu0 %v711_v14  ;;  %v729_v11 = vld [vmem:[%s2772_s3 + $0x208] sm:$0xff]  ;;  %v744_v13 = vld [vmem:[%s2772_s3 + $0x280] sm:$0xff] }
  0x5a   : > { %1655 = vmatpush3.msra.mxu1 %v743_v15  ;;  %1618 = vmatprep.subr.mxu0 %v726_v16  ;;  %v696_v14 = vld [vmem:[%s2772_s3 + $0x100] sm:$0xff]  ;;  %v655_v15 = vld [vmem:[%s2464_s23 + $0x18] sm:$0xff] }
  0x5b   : > { %1656 = vmatprep.subr.mxu1 %v758_v17  ;;  %643 = vmatprep.mubr.f32.mxu0 %v327_v18  ;;  %v728_v16 = vld [vmem:[%s2772_s3 + $0x200] sm:$0xff]  ;;  %v657_v17 = vld [vmem:[%s2464_s23 + $0x28] sm:$0xff]  ;;  %v654_v18 = vld [vmem:[%s2464_s23 + $0x10] sm:$0xff] }
  0x5c   : > { %1619 = vmatpush3.msra.mxu0 %v710_v19  ;;  %1657 = vmatpush3.msra.mxu1 %v742_v20  ;;  %v656_v19 = vld [vmem:[%s2464_s23 + $0x20] sm:$0xff]  ;;  %v661_v20 = vld [vmem:[%s2464_s23 + $0x48] sm:$0xff] }
  0x5d   : > { %644 = vmatmul.mubr.f32.gmra.mxu0 %v326_v21  ;;  %1620 = vmatprep.subr.mxu0 %v725_v22  ;;  %v663_v21 = vld [vmem:[%s2464_s23 + $0x58] sm:$0xff]  ;;  %v660_v22 = vld [vmem:[%s2464_s23 + $0x40] sm:$0xff] }
  0x5e   : > { %1658 = vmatprep.subr.mxu1 %v757_v23  ;;  %1621 = vmatpush3.msra.mxu0 %v709_v24  ;;  %v662_v23 = vld [vmem:[%s2464_s23 + $0x50] sm:$0xff]  ;;  %s2684_s23 = scalar_lea.vmem [#allocation2], %s2681_s17  }
  0x5f   : > { %1659 = vmatpush3.msra.mxu1 %v741_v25  ;;  %1622 = vmatprep.subr.mxu0 %v724_v26 }
  0x60   : > { %1660 = vmatprep.subr.mxu1 %v756_v27  ;;  %1623 = vmatpush3.msra.mxu0 %v708_v28 }
  0x61   : > { %1661 = vmatpush3.msra.mxu1 %v740_v29  ;;  %1624 = vmatprep.subr.mxu0 %v723_v30 }
  0x62   : > { %1662 = vmatprep.subr.mxu1 %v755_v31  ;;  %1625 = vmatpush3.msra.mxu0 %v707_v32 }
  0x63   : > { %1663 = vmatpush3.msra.mxu1 %v739_v33  ;;  %1626 = vmatprep.subr.mxu0 %v722_v34 }
  0x64   : > { %1664 = vmatprep.subr.mxu1 %v754_v35  ;;  %1627 = vmatpush3.msra.mxu0 %v706_v36 }
  0x65   : > { %1665 = vmatpush3.msra.mxu1 %v738_v37  ;;  %1628 = vmatprep.subr.mxu0 %v721_v38 }
  0x66   : > { %1666 = vmatprep.subr.mxu1 %v753_v39  ;;  %1629 = vmatpush3.msra.mxu0 %v705_v40 }
  0x67   : > { %1667 = vmatpush3.msra.mxu1 %v737_v41  ;;  %1630 = vmatprep.subr.mxu0 %v720_v42 }
  0x68   : > { %1668 = vmatprep.subr.mxu1 %v752_v43  ;;  %1631 = vmatpush3.msra.mxu0 %v704_v44 }
  0x69   : > { %1669 = vmatpush3.msra.mxu1 %v736_v45  ;;  %1632 = vmatprep.subr.mxu0 %v719_v46 }
  0x6a   : > { %1670 = vmatprep.subr.mxu1 %v751_v47  ;;  %1633 = vmatpush3.msra.mxu0 %v703_v48 }
  0x6b   : > { %1671 = vmatpush3.msra.mxu1 %v735_v49  ;;  %1634 = vmatprep.subr.mxu0 %v718_v50 }
  0x6c   : > { %1672 = vmatprep.subr.mxu1 %v750_v51  ;;  %1635 = vmatpush3.msra.mxu0 %v702_v52 }
  0x6d   : > { %1673 = vmatpush3.msra.mxu1 %v734_v53  ;;  %1636 = vmatprep.subr.mxu0 %v717_v54 }
  0x6e   : > { %1674 = vmatprep.subr.mxu1 %v749_v55  ;;  %1637 = vmatpush3.msra.mxu0 %v701_v56 }
  0x6f   : > { %1675 = vmatpush3.msra.mxu1 %v733_v57  ;;  %1638 = vmatprep.subr.mxu0 %v716_v58 }
  0x70   : > { %1676 = vmatprep.subr.mxu1 %v748_v59  ;;  %1639 = vmatpush3.msra.mxu0 %v700_v60 }
  0x71   : > { %1677 = vmatpush3.msra.mxu1 %v732_v61  ;;  %1640 = vmatprep.subr.mxu0 %v715_v62 }
  0x72   : > { %1678 = vmatprep.subr.mxu1 %v747_v63  ;;  %1641 = vmatpush3.msra.mxu0 %v699_v0 }
  0x73   : > { %1679 = vmatpush3.msra.mxu1 %v731_v1  ;;  %1642 = vmatprep.subr.mxu0 %v714_v2 }
  0x74   : > { %1680 = vmatprep.subr.mxu1 %v746_v3  ;;  %829 = vmatprep.mubr.f32.mxu1 %v659_v4 }
  0x75   : > { %1643 = vmatpush3.msra.mxu0 %v698_v5  ;;  %1681 = vmatpush3.msra.mxu1 %v730_v6 }
  0x76   : > { %1644 = vmatprep.subr.mxu0 %v713_v7  ;;  %830 = vmatmul.mubr.f32.gmra.mxu1 %v658_v8 }
  0x77   : > { %1682 = vmatprep.subr.mxu1 %v745_v9  ;;  %1645 = vmatpush3.msra.mxu0 %v697_v10 }
  0x78   : > { %1683 = vmatpush3.msra.mxu1 %v729_v11  ;;  %1646 = vmatprep.subr.mxu0 %v712_v12 }
  0x79   : > { %1684 = vmatprep.subr.mxu1 %v744_v13  ;;  %1647 = vmatpush3.msra.mxu0 %v696_v14 }
  0x7a   : > { %899 = vmatprep.mubr.f32.mxu0 %v655_v15  ;;  %1685 = vmatpush3.msra.mxu1 %v728_v16 }
  0x7b   : > { %974 = vmatprep.mubr.f32.mxu1 %v657_v17  ;;  %900 = vmatmul.mubr.f32.vlgmr.msra.gmra.mxu0 %v654_v18 }
  0x7c   : > { %975 = vmatmul.mubr.f32.vlgmr.msra.gmra.mxu1 %v656_v19  ;;  %904 = vmatprep.mubr.f32.mxu0 %v661_v20 }
  0x7d   : > { %979 = vmatprep.mubr.f32.mxu1 %v663_v21 }
  0x7f   : > { %905 = vmatmul.mubr.f32.gmra.mxu0 %v660_v22 }
  0x80   : > { %980 = vmatmul.mubr.f32.gmra.mxu1 %v662_v23 }
  0xf3   : > { %v1496_v24 = vpop.f32.mrf.mxu0 }
  0xf4   : > { %v1534_v25 = vpop.f32.mrf.mxu1 }
  0xf5   : > { %v1497_v26 = vpop.f32.mrf.mxu0 }
  0xf6   : > { %v1535_v28 = vpop.f32.mrf.mxu1  ;;  %v1498_v31 = vadd.f32 %v1497_v26, %v1496_v24 }
  0xf7   : > { %v1536_v32 = vadd.f32 %v1535_v28, %v1534_v25 }
  0xf9   : > { %v566_v36 = vadd.f32 %v1536_v32, %v1498_v31 }
 0x110   : > { %v1499_v27 = vpop.f32.mrf.mxu0 }
 0x111   : > { %v1537_v30 = vpop.f32.mrf.mxu1 }
 0x112   : > { %v1500_v29 = vpop.f32.mrf.mxu0 }
 0x113   : > { %v1538_v34 = vpop.f32.mrf.mxu1  ;;  %v1501_v38 = vadd.f32 %v1500_v29, %v1499_v27 }
 0x114   : > { %v1539_v39 = vadd.f32 %v1538_v34, %v1537_v30 }
 0x116   : > { %v571_v43 = vadd.f32 %v1539_v39, %v1501_v38 }
 0x117   : > { %v1572_v33 = vpop.f32.mrf.mxu0 }
 0x119   : > { %v1573_v35 = vpop.f32.mrf.mxu0  ;;  %v1610_v46 = vpop.f32.mrf.mxu1 }
 0x11a   : > { %v1574_v37 = vadd.f32 %v1573_v35, %v1572_v33 }
 0x11b   : > { %v1611_v47 = vpop.f32.mrf.mxu1 }
 0x11c   : > { %v641_v40 = vadd.f32 %v1574_v37, %v566_v36  ;;  %v1612_v54 = vadd.f32 %v1611_v47, %v1610_v46 }
 0x11d   : > { %v1575_v41 = vpop.f32.mrf.mxu0 }
 0x11e   : > { %650 = vst.msk [vmem:[%s2684_s23] sm:$0xff] %vm649_vm0, %v641_v40 }
 0x11f   : > { %v1576_v42 = vpop.f32.mrf.mxu0 }
 0x120   : > { %v1577_v44 = vadd.f32 %v1576_v42, %v1575_v41 }
 0x122   : > { %v646_v45 = vadd.f32 %v1577_v44, %v571_v43 }
 0x124   : > { %651 = vst.msk [vmem:[%s2684_s23 + $0x8] sm:$0xff] %vm649_vm0, %v646_v45 }
 0x136   : > { %v1613_v48 = vpop.f32.mrf.mxu1 }
 0x138   : > { %v1614_v49 = vpop.f32.mrf.mxu1 }
 0x139   : > { %v1615_v62 = vadd.f32 %v1614_v49, %v1613_v48 }
 0x13b   : > { %v1648_v50 = vpop.f32.mrf.mxu0 }
 0x13c   : > { %v1686_v51 = vpop.f32.mrf.mxu1 }
 0x13d   : > { %v1649_v52 = vpop.f32.mrf.mxu0 }
 0x13e   : > { %v1687_v53 = vpop.f32.mrf.mxu1  ;;  %v1650_v55 = vadd.f32 %v1649_v52, %v1648_v50 }
 0x13f   : > { %v1651_v56 = vpop.f32.mrf.mxu0  ;;  %v1688_v59 = vadd.f32 %v1687_v53, %v1686_v51 }
 0x140   : > { %v1689_v57 = vpop.f32.mrf.mxu1  ;;  %v902_v58 = vadd.f32 %v1650_v55, %v1612_v54 }
 0x141   : > { %v1652_v60 = vpop.f32.mrf.mxu0 }
 0x142   : > { %v1690_v61 = vpop.f32.mrf.mxu1  ;;  %v977_v63 = vadd.f32 %v1688_v59, %v902_v58  ;;  %v1653_v0 = vadd.f32 %v1652_v60, %v1651_v56 }
 0x143   : > { %v1691_v2 = vadd.f32 %v1690_v61, %v1689_v57 }
 0x144   : > { %985 = vst.msk [vmem:[%s2691_s18] sm:$0xff] %vm649_vm0, %v977_v63  ;;  %v907_v1 = vadd.f32 %v1653_v0, %v1615_v62  ;;  %997 = sbr.rel (!%p2052_p4) target bundleno = 368 (0x170), region = 40 }
 0x146   : > { %v982_v3 = vadd.f32 %v1691_v2, %v907_v1 }
 0x148   : > { %986 = vst.msk [vmem:[%s2691_s18 + $0x8] sm:$0xff] %vm649_vm0, %v982_v3 }
 0x149   : > { %s2780_s20 = smov (!%p1000_p8, %s999_s20), 2 }
 0x14a   : > { %s1429_s12 = sshll.u32 %s2780_s20, 7 }
 0x14b   : > { %p1432_p9 = scmp.eq.s32.totalorder %s1429_s12, 0 }
 0x14c   : > { %s2710_s11 = sshrl.u32 (!%p1432_p9), %s2780_s20, 1 }
 0x14d   : > { %1008 = sbr.rel (%p1432_p9) target bundleno = 368 (0x170), region = 44  ;;  %p1433_p10 = scmp.le.s32.totalorder (!%p1432_p9), %s2710_s11, 0 }
 0x152   : > { %1329 = sbr.rel (%p1433_p10) target bundleno = 351 (0x15f), region = 195  ;;  %s1933_s6 = smov (!%p1433_p10), %s2704_s30  }
 0x153   : > { %s1937_s7 = smov (!%p1433_p10), %s2684_s23   ;;  %s1941_s8 = smov (!%p1433_p10), 0  }
 0x154   : > { %s1945_s9 = smov (!%p1433_p10), 0  }
 0x157 LB: >> { %v1073_v4 = vld [vmem:[%s1939_s7] sm:$0xff]  ;;  %v1075_v5 = vld [vmem:[%s1939_s7 + $0x8] sm:$0xff]  ;;  %s1077_s10 = sadd.s32 1, %s1943_s8  ;;  %s1067_s9 = sadd.s32 1, %s1947_s9   ;;  %s1947_s9 = sphi %s1945_s9, %s1067_s9   ;;  %s1943_s8 = sphi %s1941_s8, %s1942_s8   ;;  %s1939_s7 = sphi %s1937_s7, %s1082_s7   ;;  %s1935_s6 = sphi %s1933_s6, %s1083_s6  }
 0x158   : >> { %1074 = vst [vmem:[%s1935_s6] sm:$0xff] %v1073_v4  ;;  %1076 = vst [vmem:[%s1935_s6 + $0x8] sm:$0xff] %v1075_v5  ;;  %p1078_p11 = scmp.ge.s32.totalorder %s1077_s10, %s2710_s11  ;;  %p1066_p12 = scmp.ge.s32.totalorder %s1067_s9, %s2710_s11 }
 0x15a   : >> { %s2782_s10 = smov (%p1078_p11, %s1077_s10), 0  ;;  %1069 = sbr.rel (!%p1066_p12) target bundleno = 343 (0x157), region = 201 }
 0x15b   : >> { %s1434_s13 = sshll.u32 %s2782_s10, 4  ;;  %s1942_s8 = smov %s2782_s10  }
 0x15c   : >> { %s1082_s7 = scalar_lea.vmem %s2684_s23, %s1434_s13 [#allocation2]   ;;  %s1083_s6 = scalar_lea.vmem %s2704_s30, %s1434_s13  }
 0x15f PF: > { %s2720_s15 = sand.u32 1, %s2780_s20   ;;  %s1459_s14 = sshll.u32 %s2710_s11, 4 }
 0x160   : > { %s1088_s16 = scalar_lea.vmem %s2684_s23, %s1459_s14 [#allocation2]   ;;  %s1090_s17 = scalar_lea.vmem %s2704_s30, %s1459_s14  }
 0x161   : > { %p1439_p13 = scmp.le.s32.totalorder %s2720_s15, 0 }
 0x162   : > { %s1949_s27 = smov (!%p1439_p13), %s1090_s17   ;;  %s1953_s28 = smov (!%p1439_p13), %s1088_s16  }
 0x163   : > { %1343 = sbr.rel (%p1439_p13) target bundleno = 368 (0x170), region = 206  ;;  %s1957_s29 = smov (!%p1439_p13), 0  }
 0x164   : > { %s1961_s12 = smov (!%p1439_p13), 0  }
 0x168 LB: >> { %v1100_v6 = vld [vmem:[%s1955_s28] sm:$0xff]  ;;  %s1102_s20 = sadd.s32 1, %s1959_s29  ;;  %s1094_s12 = sadd.s32 1, %s1963_s12   ;;  %s1963_s12 = sphi %s1961_s12, %s1094_s12   ;;  %s1959_s29 = sphi %s1957_s29, %s1958_s29   ;;  %s1955_s28 = sphi %s1953_s28, %s1107_s28   ;;  %s1951_s27 = sphi %s1949_s27, %s1108_s27  }
 0x169   : >> { %1101 = vst [vmem:[%s1951_s27] sm:$0xff] %v1100_v6  ;;  %p1103_p0 = scmp.ge.s32.totalorder %s1102_s20, %s2720_s15  ;;  %p1093_p1 = scmp.ge.s32.totalorder %s1094_s12, %s2720_s15 }
 0x16b   : >> { %s2784_s20 = smov (%p1103_p0, %s1102_s20), 0  ;;  %1096 = sbr.rel (!%p1093_p1) target bundleno = 360 (0x168), region = 212 }
 0x16c   : >> { %s1440_s23 = sshll.u32 %s2784_s20, 3  ;;  %s1958_s29 = smov %s2784_s20  }
 0x16d   : >> { %s1107_s28 = scalar_lea.vmem %s1088_s16, %s1440_s23 [#allocation2]   ;;  %s1108_s27 = scalar_lea.vmem %s1090_s17, %s1440_s23  }
 0x170 PF: > { %1114 = sbr.rel (!%p2052_p4) target bundleno = 412 (0x19c), region = 92  ;;  %s1116_s30 = ssub.s32 (%p2052_p4), 3, %s2141_s24 }
 0x171   : > { %s1461_s11 = sshll.u32 (%p2052_p4), %s2040_s21, 4  ;;  %p1117_p2 = scmp.lt.s32.totalorder (%p2052_p4), %s1116_s30, 2 }
 0x172   : > { %s2735_s8 = scalar_lea.vmem (%p2052_p4), %s2774_s5, %s1461_s11  }
 0x175   : > { %s2786_s30 = smov (!%p1117_p2, %s1116_s30), 2 }
 0x176   : > { %s1443_s9 = sshll.u32 %s2786_s30, 7 }
 0x177   : > { %p1446_p3 = scmp.eq.s32.totalorder %s1443_s9, 0 }
 0x178   : > { %s2741_s10 = sshrl.u32 (!%p1446_p3), %s2786_s30, 1 }
 0x179   : > { %1125 = sbr.rel (%p1446_p3) target bundleno = 412 (0x19c), region = 96  ;;  %p1447_p4 = scmp.le.s32.totalorder (!%p1446_p3), %s2741_s10, 0 }
 0x17e   : > { %1357 = sbr.rel (%p1447_p4) target bundleno = 395 (0x18b), region = 217  ;;  %s1965_s21 = smov (!%p1447_p4), %s2735_s8  }
 0x17f   : > { %s1969_s26 = smov (!%p1447_p4), %s2691_s18   ;;  %s1973_s24 = smov (!%p1447_p4), 0  }
 0x180   : > { %s1977_s13 = smov (!%p1447_p4), 0  }
 0x183 LB: >> { %v1190_v7 = vld [vmem:[%s1971_s26] sm:$0xff]  ;;  %v1192_v8 = vld [vmem:[%s1971_s26 + $0x8] sm:$0xff]  ;;  %s1194_s15 = sadd.s32 1, %s1975_s24  ;;  %s1184_s13 = sadd.s32 1, %s1979_s13   ;;  %s1979_s13 = sphi %s1977_s13, %s1184_s13   ;;  %s1975_s24 = sphi %s1973_s24, %s1974_s24   ;;  %s1971_s26 = sphi %s1969_s26, %s1199_s26   ;;  %s1967_s21 = sphi %s1965_s21, %s1200_s21  }
 0x184   : >> { %1191 = vst [vmem:[%s1967_s21] sm:$0xff] %v1190_v7  ;;  %1193 = vst [vmem:[%s1967_s21 + $0x8] sm:$0xff] %v1192_v8  ;;  %p1195_p5 = scmp.ge.s32.totalorder %s1194_s15, %s2741_s10  ;;  %p1183_p6 = scmp.ge.s32.totalorder %s1184_s13, %s2741_s10 }
 0x186   : >> { %s2788_s15 = smov (%p1195_p5, %s1194_s15), 0  ;;  %1186 = sbr.rel (!%p1183_p6) target bundleno = 387 (0x183), region = 223 }
 0x187   : >> { %s1448_s14 = sshll.u32 %s2788_s15, 4  ;;  %s1974_s24 = smov %s2788_s15  }
 0x188   : >> { %s1199_s26 = scalar_lea.vmem %s2691_s18, %s1448_s14 [#allocation3]   ;;  %s1200_s21 = scalar_lea.vmem %s2735_s8, %s1448_s14  }
 0x18b PF: > { %s2751_s16 = sand.u32 1, %s2786_s30   ;;  %s1462_s17 = sshll.u32 %s2741_s10, 4 }
 0x18c   : > { %s1205_s27 = scalar_lea.vmem %s2691_s18, %s1462_s17 [#allocation3]   ;;  %s1207_s28 = scalar_lea.vmem %s2735_s8, %s1462_s17  }
 0x18d   : > { %p1453_p7 = scmp.le.s32.totalorder %s2751_s16, 0 }
 0x18e   : > { %s1981_s29 = smov (!%p1453_p7), %s1207_s28   ;;  %s1985_s12 = smov (!%p1453_p7), %s1205_s27  }
 0x18f   : > { %1371 = sbr.rel (%p1453_p7) target bundleno = 412 (0x19c), region = 228  ;;  %s1989_s20 = smov (!%p1453_p7), 0  }
 0x190   : > { %s1993_s23 = smov (!%p1453_p7), 0  }
 0x194 LB: >> { %v1217_v9 = vld [vmem:[%s1987_s12] sm:$0xff]  ;;  %s1219_s30 = sadd.s32 1, %s1991_s20  ;;  %s1211_s23 = sadd.s32 1, %s1995_s23   ;;  %s1995_s23 = sphi %s1993_s23, %s1211_s23   ;;  %s1991_s20 = sphi %s1989_s20, %s1990_s20   ;;  %s1987_s12 = sphi %s1985_s12, %s1224_s12   ;;  %s1983_s29 = sphi %s1981_s29, %s1225_s29  }
 0x195   : >> { %1218 = vst [vmem:[%s1983_s29] sm:$0xff] %v1217_v9  ;;  %p1220_p8 = scmp.ge.s32.totalorder %s1219_s30, %s2751_s16  ;;  %p1210_p9 = scmp.ge.s32.totalorder %s1211_s23, %s2751_s16 }
 0x197   : >> { %s2790_s30 = smov (%p1220_p8, %s1219_s30), 0  ;;  %1213 = sbr.rel (!%p1210_p9) target bundleno = 404 (0x194), region = 234 }
 0x198   : >> { %s1454_s18 = sshll.u32 %s2790_s30, 3  ;;  %s1990_s20 = smov %s2790_s30  }
 0x199   : >> { %s1224_s12 = scalar_lea.vmem %s1205_s27, %s1454_s18 [#allocation3]   ;;  %s1225_s29 = scalar_lea.vmem %s1207_s28, %s1454_s18  }
 0x19c PF: > { %p13_p10 = scmp.ge.s32.totalorder %s2042_s22, 4   ;;  %s2776_s18 = smov %s1927_s19 }
 0x19d   : > { %s2777_s19 = smov %s2050_s25  ;;  %s2778_s20 = smov %s2042_s22 }
 0x19e   :  { %15 = sbr.rel (!%p13_p10) target bundleno = 2 (0x2), region = 245 }

</bundles_post_ra>
